<compile_context>
chip_gen: v5e
topology: v5e:2x2
jax: 0.10.0
libtpu: 0.0.40
codegen_flags: <defaults>
</compile_context>

<pallas_src>
import math

import jax
import jax.numpy as jnp
from jax.experimental import pallas as pl
from jax.experimental.pallas import tpu as pltpu

_LANE = 128
_SUBLANE = 8


def _copy_kernel(x_ref, o_ref):
    # Pure data movement: one lane-dense, sublane-aligned tile per grid step.
    o_ref[...] = x_ref[...]


def _default_block_bytes():
    """Generation-aware block size for a pure HBM-bandwidth copy."""
    try:
        kind = jax.devices()[0].device_kind.lower()
    except Exception:
        kind = ""
    if "v6" in kind:
        # v6e: 128 MiB VMEM, ~1.4 TB/s -> fat 8 MiB tiles amortize step cost.
        return 8 * 1024 * 1024
    if "v5 lite" in kind or "v5e" in kind:
        # v5e: ~0.82 TB/s -> 4 MiB already makes step overhead negligible.
        return 4 * 1024 * 1024
    # v7x (64 MiB VMEM, ~3.2 TB/s) and unknown chips: 4 MiB keeps the ~0.35 us
    # per-step overhead small while double-buffered in+out stays <= 16 MiB.
    return 4 * 1024 * 1024


def _pick_lane_width(n):
    """Largest multiple of 128 dividing n (None if n % 128 != 0).

    Capped so the flat view keeps >= 8 rows when possible, giving full
    (8, 128)-tile blocks with unmasked loads/stores.
    """
    cap = 2048
    if n >= _SUBLANE * _LANE:
        cap = min(cap, n // _SUBLANE)
    cap = min(cap, n)
    cap -= cap % _LANE
    for lanes in range(cap, 0, -_LANE):
        if n % lanes == 0:
            return lanes
    return None


def channelize(x, n_channels, height, width, *, block_bytes=None,
               inplace_alias=True):
    """Pallas implementation of Channelize.forward: x.view(B, C, H, W)."""
    b = x.shape[0]
    f = n_channels * height * width
    if math.prod(x.shape[1:]) != f:
        raise ValueError(
            f"Cannot channelize input of shape {x.shape} into "
            f"({b}, {n_channels}, {height}, {width})")

    out_shape = (b, n_channels, height, width)
    n_total = b * f
    dtype = x.dtype
    itemsize = jnp.dtype(dtype).itemsize

    lanes = _pick_lane_width(n_total) if n_total > 0 else None
    if lanes is None:
        # Awkward/empty total size: a row-major view is metadata-only, so a
        # materializing kernel adds nothing -- follow the reshape fast path
        # (exact torch .view semantics, zero data movement).
        return x.reshape(out_shape)

    rows = n_total // lanes
    if block_bytes is None:
        block_bytes = _default_block_bytes()

    # Row block: multiple of 8 (or the full extent) sized toward block_bytes.
    row_bytes = lanes * itemsize
    target_rows = max(1, block_bytes // row_bytes)
    if target_rows >= rows:
        bm = rows                                   # full extent: always legal
    else:
        bm = max(_SUBLANE, (target_rows // _SUBLANE) * _SUBLANE)
        bm = min(bm, rows)

    # Aim for >= 8 grid steps when the slab is big enough (>= 2x pipeline
    # depth per TensorCore on v7x's two cores).
    min_steps = 8
    if rows >= min_steps * _SUBLANE:
        cap_bm = ((rows // min_steps) // _SUBLANE) * _SUBLANE
        if cap_bm >= _SUBLANE:
            bm = min(bm, cap_bm)

    grid_rows = pl.cdiv(rows, bm)                   # masked edge block is fine

    # Double-buffered input + output blocks plus headroom; well under 64 MiB
    # physical VMEM on v7x and 128 MiB on v5e/v6e.
    block_bytes_actual = bm * row_bytes
    vmem_limit = min(96 * 1024 * 1024,
                     max(16 * 1024 * 1024, 6 * block_bytes_actual))

    x_flat = x.reshape(rows, lanes)                 # row-major: metadata-only

    out_flat = pl.pallas_call(
        _copy_kernel,
        out_shape=jax.ShapeDtypeStruct((rows, lanes), dtype),
        grid=(grid_rows,),
        in_specs=[pl.BlockSpec((bm, lanes), lambda i: (i, 0))],
        out_specs=pl.BlockSpec((bm, lanes), lambda i: (i, 0)),
        # Exact identity copy -> output may alias the input buffer; when the
        # enclosing jit donates it, no second HBM allocation is made.
        input_output_aliases=({0: 0} if inplace_alias else {}),
        compiler_params=pltpu.CompilerParams(
            dimension_semantics=("parallel",),
            vmem_limit_bytes=vmem_limit,
        ),
        # Purely memory-bound: zero flops, 2*N bytes of HBM traffic.
        cost_estimate=pl.CostEstimate(
            flops=0,
            transcendentals=0,
            bytes_accessed=2 * n_total * itemsize,
        ),
    )(x_flat)

    # Row-major reshape to (B, C, H, W): metadata-only, matches .view.
    return out_flat.reshape(out_shape)


if __name__ == "__main__":
    key = jax.random.PRNGKey(0)
    B, C, H, W = 2, 4, 16, 16

    # Channelize takes a flattened input of shape (B, C*H*W).
    x = jax.random.normal(key, (B, C * H * W), dtype=jnp.float32)

    out = jax.block_until_ready(channelize(x, C, H, W))

    ref = x.reshape(B, C, H, W)
    assert out.shape == ref.shape == (B, C, H, W)
    assert out.dtype == ref.dtype
    assert jnp.array_equal(out, ref), "Pallas Channelize mismatch vs reference"

    print("KERNEL_OK")
</pallas_src>

<mosaic_0001>
module attributes {stable_mosaic.version = 11 : i64} {
  func.func @_copy_kernel(%arg0: i32, %arg1: memref<8x256xf32, #tpu.memory_space<vmem>>, %arg2: memref<8x256xf32, #tpu.memory_space<vmem>>) attributes {dimension_semantics = [#tpu.dimension_semantics<parallel>], iteration_bounds = array<i64: 1>, scalar_prefetch = 0 : i64, scratch_operands = 0 : i64, tpu.core_type = #tpu.core_type<tc>, window_params = [{transform_indices = @transform_0, window_bounds = array<i64: 8, 256>}, {transform_indices = @transform_1, window_bounds = array<i64: 8, 256>}]} {
    %c0 = arith.constant 0 : index
    %c0_0 = arith.constant 0 : index
    %0 = vector.load %arg1[%c0, %c0_0] : memref<8x256xf32, #tpu.memory_space<vmem>>, vector<8x256xf32>
    %c0_1 = arith.constant 0 : index
    %c0_2 = arith.constant 0 : index
    %1 = vector.load %arg2[%c0_1, %c0_2] : memref<8x256xf32, #tpu.memory_space<vmem>>, vector<8x256xf32>
    tpu.vector_store %arg2[%c0_1, %c0_2], %0 {strides = array<i32>} : memref<8x256xf32, #tpu.memory_space<vmem>>, vector<8x256xf32>,
    return
  }
  func.func @transform_0(%arg0: i32) -> (i32, i32) {
    %c0_i32 = arith.constant 0 : i32
    %c0_i32_0 = arith.constant 0 : i32
    return %arg0, %c0_i32 : i32, i32
  }
  func.func @transform_1(%arg0: i32) -> (i32, i32) {
    %c0_i32 = arith.constant 0 : i32
    %c0_i32_0 = arith.constant 0 : i32
    return %arg0, %c0_i32 : i32, i32
  }
}

</mosaic_0001>

<bundles_post_ra>
// kernel: tpu_custom_call.1
= control target key start
LH: loop header
LB: loop body
LE: loop exit
PB: predicated region body
PF: predicated region fallthrough
CT: control target
= control target key end

     0   :  { %6 = vsyncpa [#allocation3], 0  ;;  %s116_s0 = inlined_call_operand.hbm [shape: f32[8,256], index: 0, kind: input, shape index: {}, may-alias: {0,1}]   ;;  %s117_s1 = inlined_call_operand.hbm [shape: f32[8,256], index: 1, kind: output, shape index: {}, may-alias: {0,1}]  }
   0x1   :  { %7 = vsyncpa [#allocation4], 0  ;;  %s13_s8 = sshll.u32 %s116_s0, 4  ;;  %s98_s9 = smov [#allocation2]   ;;  %s14_s8 = int_to_ptr.hbm [resolvable:$true] %s13_s8 }
   0x2   :  { %s15_s10 = sshll.u32 %s98_s9, 4  ;;  %s16_s10 = int_to_ptr.vmem [resolvable:$true] %s15_s10 }
   0x3   :  { %18 = dma.hbm_to_vmem [thread:$0]  %s14_s8, 256, %s16_s10, [#allocation3]  }
   0x4   :  { %94 = dma.done.wait [#allocation3], 256  }
   0x5   :  { %95 = vsyncadd [#allocation3], 4294967040  ;;  %s99_s11 = smov [#allocation5]   ;;  %s34_s15 = sshll.u32 %s117_s1, 4  ;;  %v23_v0 = vld [vmem:[#allocation2] sm:$0xff]  ;;  %v24_v1 = vld [vmem:[#allocation2 + $0x8] sm:$0xff]  ;;  %s35_s15 = int_to_ptr.hbm [resolvable:$true] %s34_s15 }
   0x6   :  { %s32_s12 = sshll.u32 %s99_s11, 4  ;;  %25 = vst [vmem:[#allocation5] sm:$0xff] %v23_v0  ;;  %s33_s12 = int_to_ptr.vmem [resolvable:$true] %s32_s12 }
   0x7   :  { %26 = vst [vmem:[#allocation5 + $0x8] sm:$0xff] %v24_v1 }
   0x8   :  { %37 = dma.vmem_to_hbm [thread:$0]  %s33_s12, 256, %s35_s15, [#allocation4]  }
   0x9   :  { %96 = dma.done.wait [#allocation4], 256  }
   0xa   :  { %97 = vsyncadd [#allocation4], 4294967040 }
   0xb   :  { %42 = vsyncpa [#allocation3], 1 }
   0xc   :  { %43 = vsyncpa [#allocation4], 1 }

</bundles_post_ra>
